<compile_context>
chip_gen: v7x
topology: tpu7x:2x2x1
jax: 0.10.0
libtpu: 0.0.40
codegen_flags: <defaults>
</compile_context>

<pallas_src>
import math
import functools

import jax
import jax.numpy as jnp
from jax.experimental import pallas as pl
from jax.experimental.pallas import tpu as pltpu


# ----------------------------- Kernel 1: scores -----------------------------
def score_kernel(x_ref, w_ref, m_ref, s_ref):
    # x_ref: (TM, F), w_ref: (1, F) pre-normalized scorer, m_ref/s_ref: (TM, 1)
    # VPU multiply + XLU lane reduce; kernel is HBM-bound on x either way and
    # this keeps the MXU/vext slot free.
    s_ref[...] = (jnp.sum(x_ref[...] * w_ref[...], axis=-1, keepdims=True)
                  + m_ref[...])


def _pick_tile_m(n, f):
    """Rows per score tile: whole array when small, else a VMEM-friendly tile."""
    if n <= 1024:
        return n
    # ~4 MiB per input buffer; x2 double-buffering stays well below the scoped
    # VMEM default on all of v5e / v6e / v7x (v7x has only 64 MiB physical).
    tm = max(8, min(1024, (4 * 1024 * 1024) // (4 * f)))
    return (tm // 8) * 8


def compute_scores(node_embs, scorer_row, mask):
    N, F = node_embs.shape
    tm = _pick_tile_m(N, F)
    return pl.pallas_call(
        score_kernel,
        out_shape=jax.ShapeDtypeStruct((N, 1), jnp.float32),
        grid=(pl.cdiv(N, tm),),
        in_specs=[
            pl.BlockSpec((tm, F), lambda i: (i, 0)),
            pl.BlockSpec((1, F), lambda i: (0, 0)),
            pl.BlockSpec((tm, 1), lambda i: (i, 0)),
        ],
        out_specs=pl.BlockSpec((tm, 1), lambda i: (i, 0)),
        compiler_params=pltpu.CompilerParams(
            dimension_semantics=("parallel",)),
    )(node_embs, scorer_row, mask)


# -------------------- Kernel 2: batched gather + scale --------------------
def gather_scale_kernel(idx_ref, scale_ref, x_hbm, out_ref, rows, sem):
    # idx_ref  : (k_pad,) int32 in SMEM (scalar-prefetched top-k row indices)
    # scale_ref: (G, 1)  f32 block of precomputed tanh(topk scores)
    # x_hbm    : (N, F)  node embeddings left in HBM (memory_space=pl.ANY)
    # out_ref  : (G, F)  output block
    # rows     : (G, F)  VMEM scratch
    # sem      : (G,)    DMA semaphores
    G = out_ref.shape[0]
    base = pl.program_id(0) * G
    copies = []
    for r in range(G):                       # static unroll: G row DMAs in flight
        row = idx_ref[base + r]
        cp = pltpu.make_async_copy(
            x_hbm.at[pl.ds(row, 1), :], rows.at[pl.ds(r, 1), :], sem.at[r])
        cp.start()
        copies.append(cp)
    for cp in copies:
        cp.wait()
    out_ref[...] = rows[...] * scale_ref[...]


def gather_and_scale(node_embs, topk_indices, tanh_scores, k, group=8):
    N, F = node_embs.shape
    k_pad = pl.cdiv(k, group) * group
    if k_pad != k:
        pad = k_pad - k
        topk_indices = jnp.concatenate(
            [topk_indices, jnp.broadcast_to(topk_indices[-1], (pad,))])
        tanh_scores = jnp.concatenate(
            [tanh_scores, jnp.zeros((pad,), jnp.float32)])
    scale = tanh_scores.reshape(k_pad, 1).astype(jnp.float32)

    grid_spec = pltpu.PrefetchScalarGridSpec(
        num_scalar_prefetch=1,
        grid=(k_pad // group,),
        in_specs=[
            pl.BlockSpec((group, 1), lambda i, idx: (i, 0)),
            pl.BlockSpec(memory_space=pl.ANY),   # node_embs stays in HBM
        ],
        out_specs=pl.BlockSpec((group, F), lambda i, idx: (i, 0)),
        scratch_shapes=[
            pltpu.VMEM((group, F), jnp.float32),
            pltpu.SemaphoreType.DMA((group,)),
        ],
    )
    out = pl.pallas_call(
        gather_scale_kernel,
        out_shape=jax.ShapeDtypeStruct((k_pad, F), jnp.float32),
        grid_spec=grid_spec,
        compiler_params=pltpu.CompilerParams(
            dimension_semantics=("parallel",)),   # independent row groups (v7x 2 TCs)
    )(topk_indices.astype(jnp.int32), scale, node_embs)
    return out[:k]


# ----------------------------- TopK forward -----------------------------
@functools.partial(jax.jit, static_argnames=("k",))
def topk_forward(node_embs, scorer, mask, *, k):
    """Reproduces TopK.forward: returns (feats, k)."""
    N, F = node_embs.shape
    node_embs = node_embs.astype(jnp.float32)

    # Hoisted scorer normalization (1xF, plain-JAX glue).
    scorer_row = (scorer / jnp.sqrt(jnp.sum(scorer * scorer))
                  ).reshape(1, F).astype(jnp.float32)

    # scores = node_embs @ (scorer / ||scorer||) + mask   (Pallas kernel, tiled over N)
    scores = compute_scores(node_embs, scorer_row, mask.astype(jnp.float32))  # (N, 1)
    scores_flat = scores.reshape(-1)                                          # (N,)

    # TODO(synk): top-k selection (sorting network) is not implemented in Pallas.
    vals, idx = jax.lax.top_k(scores_flat, k)                # descending
    valid = vals > -jnp.inf
    num_valid = jnp.sum(valid.astype(jnp.int32))
    # pad_with_last_val semantics: replace trailing invalid entries with the
    # last valid index.
    last_valid = idx[jnp.maximum(num_valid - 1, 0)]
    idx = jnp.where(jnp.arange(k) < num_valid, idx, last_valid).astype(jnp.int32)

    # Precompute tanh(score) once in the wrapper (k scalars of glue).
    tanh_scores = jnp.tanh(scores_flat[idx]).astype(jnp.float32)

    # out[i] = node_embs[idx[i]] * tanh(scores[idx[i]])  (Pallas batched gather)
    selected = gather_and_scale(node_embs, idx, tanh_scores, k)   # (k, F)
    return selected.T                                             # (F, k)


# ----------------------------- Reference (pure JAX) -----------------------------
def topk_reference(node_embs, scorer, mask, k):
    scores = node_embs @ scorer / jnp.linalg.norm(scorer) + mask
    sf = scores.reshape(-1)
    vals, idx = jax.lax.top_k(sf, k)
    valid = vals > -jnp.inf
    nv = jnp.sum(valid.astype(jnp.int32))
    last = idx[jnp.maximum(nv - 1, 0)]
    idx = jnp.where(jnp.arange(k) < nv, idx, last)
    out = node_embs[idx] * jnp.tanh(sf[idx])[:, None]
    return out.T


if __name__ == "__main__":
    N, FEATS, K = 16, 128, 8

    key = jax.random.PRNGKey(0)
    k_emb, k_scorer = jax.random.split(key)

    node_embs = jax.random.normal(k_emb, (N, FEATS), dtype=jnp.float32)

    # scorer: Parameter(feats, 1), xavier_uniform_ init (deterministic here)
    bound = math.sqrt(6.0 / (FEATS + 1))
    scorer = jax.random.uniform(k_scorer, (FEATS, 1), dtype=jnp.float32,
                                minval=-bound, maxval=bound)

    # mask: 0 for kept nodes, -inf for masked-out nodes (as used by EvolveGCN)
    mask = jnp.zeros((N, 1), dtype=jnp.float32)
    mask = mask.at[jnp.array([3, 7, 11, 13])].set(-jnp.inf)

    out = topk_forward(node_embs, scorer, mask, k=K)
    out = jax.block_until_ready(out)

    ref = topk_reference(node_embs, scorer, mask, K)
    assert out.shape == (FEATS, K), out.shape
    assert jnp.allclose(out, ref, atol=1e-4, rtol=1e-5), "mismatch vs JAX reference"

    print("KERNEL_OK")
</pallas_src>

<mosaic_0001>
module attributes {stable_mosaic.version = 11 : i64} {
  func.func @score_kernel(%arg0: i32, %arg1: memref<16x128xf32, #tpu.memory_space<vmem>>, %arg2: memref<1x128xf32, #tpu.memory_space<vmem>>, %arg3: memref<16x1xf32, #tpu.memory_space<vmem>>, %arg4: memref<16x1xf32, #tpu.memory_space<vmem>>) attributes {dimension_semantics = [#tpu.dimension_semantics<parallel>], iteration_bounds = array<i64: 1>, scalar_prefetch = 0 : i64, scratch_operands = 0 : i64, tpu.core_type = #tpu.core_type<tc>, window_params = [{transform_indices = @transform_0, window_bounds = array<i64: 16, 128>}, {pipeline_mode = #tpu.pipeline_mode<synchronous>, transform_indices = @transform_1, window_bounds = array<i64: 1, 128>}, {transform_indices = @transform_2, window_bounds = array<i64: 16, 1>}, {transform_indices = @transform_3, window_bounds = array<i64: 16, 1>}]} {
    %c0 = arith.constant 0 : index
    %c0_0 = arith.constant 0 : index
    %0 = vector.load %arg1[%c0, %c0_0] : memref<16x128xf32, #tpu.memory_space<vmem>>, vector<16x128xf32>
    %c0_1 = arith.constant 0 : index
    %c0_2 = arith.constant 0 : index
    %1 = vector.load %arg2[%c0_1, %c0_2] : memref<1x128xf32, #tpu.memory_space<vmem>>, vector<1x128xf32>
    %2 = vector.broadcast %1 : vector<1x128xf32> to vector<16x128xf32>
    %3 = arith.mulf %0, %2 : vector<16x128xf32>
    %cst = arith.constant dense<0.000000e+00> : vector<16xf32>
    %4 = vector.multi_reduction <add>, %3, %cst [1] : vector<16x128xf32> to vector<16xf32>
    %5 = vector.shape_cast %4 : vector<16xf32> to vector<16x1xf32>
    %c0_3 = arith.constant 0 : index
    %c0_4 = arith.constant 0 : index
    %6 = vector.load %arg3[%c0_3, %c0_4] : memref<16x1xf32, #tpu.memory_space<vmem>>, vector<16x1xf32>
    %7 = arith.addf %5, %6 : vector<16x1xf32>
    %c0_5 = arith.constant 0 : index
    %c0_6 = arith.constant 0 : index
    %8 = vector.load %arg4[%c0_5, %c0_6] : memref<16x1xf32, #tpu.memory_space<vmem>>, vector<16x1xf32>
    tpu.vector_store %arg4[%c0_5, %c0_6], %7 {strides = array<i32>} : memref<16x1xf32, #tpu.memory_space<vmem>>, vector<16x1xf32>,
    return
  }
  func.func @transform_0(%arg0: i32) -> (i32, i32) {
    %c0_i32 = arith.constant 0 : i32
    %c0_i32_0 = arith.constant 0 : i32
    return %arg0, %c0_i32 : i32, i32
  }
  func.func @transform_1(%arg0: i32) -> (i32, i32) {
    %c0_i32 = arith.constant 0 : i32
    %c0_i32_0 = arith.constant 0 : i32
    %c0_i32_1 = arith.constant 0 : i32
    return %c0_i32, %c0_i32_0 : i32, i32
  }
  func.func @transform_2(%arg0: i32) -> (i32, i32) {
    %c0_i32 = arith.constant 0 : i32
    %c0_i32_0 = arith.constant 0 : i32
    return %arg0, %c0_i32 : i32, i32
  }
  func.func @transform_3(%arg0: i32) -> (i32, i32) {
    %c0_i32 = arith.constant 0 : i32
    %c0_i32_0 = arith.constant 0 : i32
    return %arg0, %c0_i32 : i32, i32
  }
}

module attributes {stable_mosaic.version = 11 : i64} {
  func.func @gather_scale_kernel(%arg0: i32, %arg1: memref<8xi32, #tpu.memory_space<smem>>, %arg2: memref<8x1xf32, #tpu.memory_space<vmem>>, %arg3: memref<16x128xf32, #tpu.memory_space<any>>, %arg4: memref<8x128xf32, #tpu.memory_space<vmem>>, %arg5: memref<8x128xf32, #tpu.memory_space<vmem>>, %arg6: memref<8x!tpu.dma_semaphore, #tpu.memory_space<semaphore_mem>>) attributes {dimension_semantics = [#tpu.dimension_semantics<parallel>], iteration_bounds = array<i64: 1>, scalar_prefetch = 1 : i64, scratch_operands = 2 : i64, tpu.core_type = #tpu.core_type<tc>, window_params = [{transform_indices = @transform_0, window_bounds = array<i64: 8, 1>}, {}, {transform_indices = @transform_2, window_bounds = array<i64: 8, 128>}]} {
    %c8_i32 = arith.constant 8 : i32
    %0 = arith.muli %arg0, %c8_i32 : i32
    %c0_i32 = arith.constant 0 : i32
    %1 = arith.addi %0, %c0_i32 : i32
    %2 = arith.index_cast %1 : i32 to index
    %3 = memref.load %arg1[%2] : memref<8xi32, #tpu.memory_space<smem>>
    %c0_i32_0 = arith.constant 0 : i32
    %c0_i32_1 = arith.constant 0 : i32
    %4 = tpu.memref_slice %arg3[%3, %c0_i32_1] : memref<16x128xf32, #tpu.memory_space<any>> -> memref<1x128xf32, #tpu.memory_space<any>>
    %c0_i32_2 = arith.constant 0 : i32
    %c0_i32_3 = arith.constant 0 : i32
    %5 = tpu.memref_slice %arg5[%c0_i32_2, %c0_i32_3] : memref<8x128xf32, #tpu.memory_space<vmem>> -> memref<1x128xf32, #tpu.memory_space<vmem>>
    %6 = tpu.memref_slice %arg6[%c0_i32_0] : memref<8x!tpu.dma_semaphore, #tpu.memory_space<semaphore_mem>> -> memref<1x!tpu.dma_semaphore, #tpu.memory_space<semaphore_mem>>
    %7 = tpu.memref_squeeze %6 : memref<1x!tpu.dma_semaphore, #tpu.memory_space<semaphore_mem>> -> memref<!tpu.dma_semaphore, #tpu.memory_space<semaphore_mem>>
    tpu.enqueue_dma source(%4 : memref<1x128xf32, #tpu.memory_space<any>>) target(%5 : memref<1x128xf32, #tpu.memory_space<vmem>>) target_semaphore(%7 : memref<!tpu.dma_semaphore, #tpu.memory_space<semaphore_mem>>)
    %c1_i32 = arith.constant 1 : i32
    %8 = arith.addi %0, %c1_i32 : i32
    %9 = arith.index_cast %8 : i32 to index
    %10 = memref.load %arg1[%9] : memref<8xi32, #tpu.memory_space<smem>>
    %c1_i32_4 = arith.constant 1 : i32
    %c0_i32_5 = arith.constant 0 : i32
    %11 = tpu.memref_slice %arg3[%10, %c0_i32_5] : memref<16x128xf32, #tpu.memory_space<any>> -> memref<1x128xf32, #tpu.memory_space<any>>
    %c1_i32_6 = arith.constant 1 : i32
    %c0_i32_7 = arith.constant 0 : i32
    %12 = tpu.memref_slice %arg5[%c1_i32_6, %c0_i32_7] : memref<8x128xf32, #tpu.memory_space<vmem>> -> memref<1x128xf32, #tpu.memory_space<vmem>>
    %13 = tpu.memref_slice %arg6[%c1_i32_4] : memref<8x!tpu.dma_semaphore, #tpu.memory_space<semaphore_mem>> -> memref<1x!tpu.dma_semaphore, #tpu.memory_space<semaphore_mem>>
    %14 = tpu.memref_squeeze %13 : memref<1x!tpu.dma_semaphore, #tpu.memory_space<semaphore_mem>> -> memref<!tpu.dma_semaphore, #tpu.memory_space<semaphore_mem>>
    tpu.enqueue_dma source(%11 : memref<1x128xf32, #tpu.memory_space<any>>) target(%12 : memref<1x128xf32, #tpu.memory_space<vmem>>) target_semaphore(%14 : memref<!tpu.dma_semaphore, #tpu.memory_space<semaphore_mem>>)
    %c2_i32 = arith.constant 2 : i32
    %15 = arith.addi %0, %c2_i32 : i32
    %16 = arith.index_cast %15 : i32 to index
    %17 = memref.load %arg1[%16] : memref<8xi32, #tpu.memory_space<smem>>
    %c2_i32_8 = arith.constant 2 : i32
    %c0_i32_9 = arith.constant 0 : i32
    %18 = tpu.memref_slice %arg3[%17, %c0_i32_9] : memref<16x128xf32, #tpu.memory_space<any>> -> memref<1x128xf32, #tpu.memory_space<any>>
    %c2_i32_10 = arith.constant 2 : i32
    %c0_i32_11 = arith.constant 0 : i32
    %19 = tpu.memref_slice %arg5[%c2_i32_10, %c0_i32_11] : memref<8x128xf32, #tpu.memory_space<vmem>> -> memref<1x128xf32, #tpu.memory_space<vmem>>
    %20 = tpu.memref_slice %arg6[%c2_i32_8] : memref<8x!tpu.dma_semaphore, #tpu.memory_space<semaphore_mem>> -> memref<1x!tpu.dma_semaphore, #tpu.memory_space<semaphore_mem>>
    %21 = tpu.memref_squeeze %20 : memref<1x!tpu.dma_semaphore, #tpu.memory_space<semaphore_mem>> -> memref<!tpu.dma_semaphore, #tpu.memory_space<semaphore_mem>>
    tpu.enqueue_dma source(%18 : memref<1x128xf32, #tpu.memory_space<any>>) target(%19 : memref<1x128xf32, #tpu.memory_space<vmem>>) target_semaphore(%21 : memref<!tpu.dma_semaphore, #tpu.memory_space<semaphore_mem>>)
    %c3_i32 = arith.constant 3 : i32
    %22 = arith.addi %0, %c3_i32 : i32
    %23 = arith.index_cast %22 : i32 to index
    %24 = memref.load %arg1[%23] : memref<8xi32, #tpu.memory_space<smem>>
    %c3_i32_12 = arith.constant 3 : i32
    %c0_i32_13 = arith.constant 0 : i32
    %25 = tpu.memref_slice %arg3[%24, %c0_i32_13] : memref<16x128xf32, #tpu.memory_space<any>> -> memref<1x128xf32, #tpu.memory_space<any>>
    %c3_i32_14 = arith.constant 3 : i32
    %c0_i32_15 = arith.constant 0 : i32
    %26 = tpu.memref_slice %arg5[%c3_i32_14, %c0_i32_15] : memref<8x128xf32, #tpu.memory_space<vmem>> -> memref<1x128xf32, #tpu.memory_space<vmem>>
    %27 = tpu.memref_slice %arg6[%c3_i32_12] : memref<8x!tpu.dma_semaphore, #tpu.memory_space<semaphore_mem>> -> memref<1x!tpu.dma_semaphore, #tpu.memory_space<semaphore_mem>>
    %28 = tpu.memref_squeeze %27 : memref<1x!tpu.dma_semaphore, #tpu.memory_space<semaphore_mem>> -> memref<!tpu.dma_semaphore, #tpu.memory_space<semaphore_mem>>
    tpu.enqueue_dma source(%25 : memref<1x128xf32, #tpu.memory_space<any>>) target(%26 : memref<1x128xf32, #tpu.memory_space<vmem>>) target_semaphore(%28 : memref<!tpu.dma_semaphore, #tpu.memory_space<semaphore_mem>>)
    %c4_i32 = arith.constant 4 : i32
    %29 = arith.addi %0, %c4_i32 : i32
    %30 = arith.index_cast %29 : i32 to index
    %31 = memref.load %arg1[%30] : memref<8xi32, #tpu.memory_space<smem>>
    %c4_i32_16 = arith.constant 4 : i32
    %c0_i32_17 = arith.constant 0 : i32
    %32 = tpu.memref_slice %arg3[%31, %c0_i32_17] : memref<16x128xf32, #tpu.memory_space<any>> -> memref<1x128xf32, #tpu.memory_space<any>>
    %c4_i32_18 = arith.constant 4 : i32
    %c0_i32_19 = arith.constant 0 : i32
    %33 = tpu.memref_slice %arg5[%c4_i32_18, %c0_i32_19] : memref<8x128xf32, #tpu.memory_space<vmem>> -> memref<1x128xf32, #tpu.memory_space<vmem>>
    %34 = tpu.memref_slice %arg6[%c4_i32_16] : memref<8x!tpu.dma_semaphore, #tpu.memory_space<semaphore_mem>> -> memref<1x!tpu.dma_semaphore, #tpu.memory_space<semaphore_mem>>
    %35 = tpu.memref_squeeze %34 : memref<1x!tpu.dma_semaphore, #tpu.memory_space<semaphore_mem>> -> memref<!tpu.dma_semaphore, #tpu.memory_space<semaphore_mem>>
    tpu.enqueue_dma source(%32 : memref<1x128xf32, #tpu.memory_space<any>>) target(%33 : memref<1x128xf32, #tpu.memory_space<vmem>>) target_semaphore(%35 : memref<!tpu.dma_semaphore, #tpu.memory_space<semaphore_mem>>)
    %c5_i32 = arith.constant 5 : i32
    %36 = arith.addi %0, %c5_i32 : i32
    %37 = arith.index_cast %36 : i32 to index
    %38 = memref.load %arg1[%37] : memref<8xi32, #tpu.memory_space<smem>>
    %c5_i32_20 = arith.constant 5 : i32
    %c0_i32_21 = arith.constant 0 : i32
    %39 = tpu.memref_slice %arg3[%38, %c0_i32_21] : memref<16x128xf32, #tpu.memory_space<any>> -> memref<1x128xf32, #tpu.memory_space<any>>
    %c5_i32_22 = arith.constant 5 : i32
    %c0_i32_23 = arith.constant 0 : i32
    %40 = tpu.memref_slice %arg5[%c5_i32_22, %c0_i32_23] : memref<8x128xf32, #tpu.memory_space<vmem>> -> memref<1x128xf32, #tpu.memory_space<vmem>>
    %41 = tpu.memref_slice %arg6[%c5_i32_20] : memref<8x!tpu.dma_semaphore, #tpu.memory_space<semaphore_mem>> -> memref<1x!tpu.dma_semaphore, #tpu.memory_space<semaphore_mem>>
    %42 = tpu.memref_squeeze %41 : memref<1x!tpu.dma_semaphore, #tpu.memory_space<semaphore_mem>> -> memref<!tpu.dma_semaphore, #tpu.memory_space<semaphore_mem>>
    tpu.enqueue_dma source(%39 : memref<1x128xf32, #tpu.memory_space<any>>) target(%40 : memref<1x128xf32, #tpu.memory_space<vmem>>) target_semaphore(%42 : memref<!tpu.dma_semaphore, #tpu.memory_space<semaphore_mem>>)
    %c6_i32 = arith.constant 6 : i32
    %43 = arith.addi %0, %c6_i32 : i32
    %44 = arith.index_cast %43 : i32 to index
    %45 = memref.load %arg1[%44] : memref<8xi32, #tpu.memory_space<smem>>
    %c6_i32_24 = arith.constant 6 : i32
    %c0_i32_25 = arith.constant 0 : i32
    %46 = tpu.memref_slice %arg3[%45, %c0_i32_25] : memref<16x128xf32, #tpu.memory_space<any>> -> memref<1x128xf32, #tpu.memory_space<any>>
    %c6_i32_26 = arith.constant 6 : i32
    %c0_i32_27 = arith.constant 0 : i32
    %47 = tpu.memref_slice %arg5[%c6_i32_26, %c0_i32_27] : memref<8x128xf32, #tpu.memory_space<vmem>> -> memref<1x128xf32, #tpu.memory_space<vmem>>
    %48 = tpu.memref_slice %arg6[%c6_i32_24] : memref<8x!tpu.dma_semaphore, #tpu.memory_space<semaphore_mem>> -> memref<1x!tpu.dma_semaphore, #tpu.memory_space<semaphore_mem>>
    %49 = tpu.memref_squeeze %48 : memref<1x!tpu.dma_semaphore, #tpu.memory_space<semaphore_mem>> -> memref<!tpu.dma_semaphore, #tpu.memory_space<semaphore_mem>>
    tpu.enqueue_dma source(%46 : memref<1x128xf32, #tpu.memory_space<any>>) target(%47 : memref<1x128xf32, #tpu.memory_space<vmem>>) target_semaphore(%49 : memref<!tpu.dma_semaphore, #tpu.memory_space<semaphore_mem>>)
    %c7_i32 = arith.constant 7 : i32
    %50 = arith.addi %0, %c7_i32 : i32
    %51 = arith.index_cast %50 : i32 to index
    %52 = memref.load %arg1[%51] : memref<8xi32, #tpu.memory_space<smem>>
    %c7_i32_28 = arith.constant 7 : i32
    %c0_i32_29 = arith.constant 0 : i32
    %53 = tpu.memref_slice %arg3[%52, %c0_i32_29] : memref<16x128xf32, #tpu.memory_space<any>> -> memref<1x128xf32, #tpu.memory_space<any>>
    %c7_i32_30 = arith.constant 7 : i32
    %c0_i32_31 = arith.constant 0 : i32
    %54 = tpu.memref_slice %arg5[%c7_i32_30, %c0_i32_31] : memref<8x128xf32, #tpu.memory_space<vmem>> -> memref<1x128xf32, #tpu.memory_space<vmem>>
    %55 = tpu.memref_slice %arg6[%c7_i32_28] : memref<8x!tpu.dma_semaphore, #tpu.memory_space<semaphore_mem>> -> memref<1x!tpu.dma_semaphore, #tpu.memory_space<semaphore_mem>>
    %56 = tpu.memref_squeeze %55 : memref<1x!tpu.dma_semaphore, #tpu.memory_space<semaphore_mem>> -> memref<!tpu.dma_semaphore, #tpu.memory_space<semaphore_mem>>
    tpu.enqueue_dma source(%53 : memref<1x128xf32, #tpu.memory_space<any>>) target(%54 : memref<1x128xf32, #tpu.memory_space<vmem>>) target_semaphore(%56 : memref<!tpu.dma_semaphore, #tpu.memory_space<semaphore_mem>>)
    %c0_i32_32 = arith.constant 0 : i32
    %c0_i32_33 = arith.constant 0 : i32
    %57 = tpu.memref_slice %arg3[%3, %c0_i32_33] : memref<16x128xf32, #tpu.memory_space<any>> -> memref<1x128xf32, #tpu.memory_space<any>>
    %c0_i32_34 = arith.constant 0 : i32
    %c0_i32_35 = arith.constant 0 : i32
    %58 = tpu.memref_slice %arg5[%c0_i32_34, %c0_i32_35] : memref<8x128xf32, #tpu.memory_space<vmem>> -> memref<1x128xf32, #tpu.memory_space<vmem>>
    %59 = tpu.memref_slice %arg6[%c0_i32_32] : memref<8x!tpu.dma_semaphore, #tpu.memory_space<semaphore_mem>> -> memref<1x!tpu.dma_semaphore, #tpu.memory_space<semaphore_mem>>
    %60 = tpu.memref_squeeze %59 : memref<1x!tpu.dma_semaphore, #tpu.memory_space<semaphore_mem>> -> memref<!tpu.dma_semaphore, #tpu.memory_space<semaphore_mem>>
    tpu.wait_dma2 semaphore(%60 : memref<!tpu.dma_semaphore, #tpu.memory_space<semaphore_mem>>) src(%57 : memref<1x128xf32, #tpu.memory_space<any>>) dst(%58 : memref<1x128xf32, #tpu.memory_space<vmem>>)
    %c1_i32_36 = arith.constant 1 : i32
    %c0_i32_37 = arith.constant 0 : i32
    %61 = tpu.memref_slice %arg3[%10, %c0_i32_37] : memref<16x128xf32, #tpu.memory_space<any>> -> memref<1x128xf32, #tpu.memory_space<any>>
    %c1_i32_38 = arith.constant 1 : i32
    %c0_i32_39 = arith.constant 0 : i32
    %62 = tpu.memref_slice %arg5[%c1_i32_38, %c0_i32_39] : memref<8x128xf32, #tpu.memory_space<vmem>> -> memref<1x128xf32, #tpu.memory_space<vmem>>
    %63 = tpu.memref_slice %arg6[%c1_i32_36] : memref<8x!tpu.dma_semaphore, #tpu.memory_space<semaphore_mem>> -> memref<1x!tpu.dma_semaphore, #tpu.memory_space<semaphore_mem>>
    %64 = tpu.memref_squeeze %63 : memref<1x!tpu.dma_semaphore, #tpu.memory_space<semaphore_mem>> -> memref<!tpu.dma_semaphore, #tpu.memory_space<semaphore_mem>>
    tpu.wait_dma2 semaphore(%64 : memref<!tpu.dma_semaphore, #tpu.memory_space<semaphore_mem>>) src(%61 : memref<1x128xf32, #tpu.memory_space<any>>) dst(%62 : memref<1x128xf32, #tpu.memory_space<vmem>>)
    %c2_i32_40 = arith.constant 2 : i32
    %c0_i32_41 = arith.constant 0 : i32
    %65 = tpu.memref_slice %arg3[%17, %c0_i32_41] : memref<16x128xf32, #tpu.memory_space<any>> -> memref<1x128xf32, #tpu.memory_space<any>>
    %c2_i32_42 = arith.constant 2 : i32
    %c0_i32_43 = arith.constant 0 : i32
    %66 = tpu.memref_slice %arg5[%c2_i32_42, %c0_i32_43] : memref<8x128xf32, #tpu.memory_space<vmem>> -> memref<1x128xf32, #tpu.memory_space<vmem>>
    %67 = tpu.memref_slice %arg6[%c2_i32_40] : memref<8x!tpu.dma_semaphore, #tpu.memory_space<semaphore_mem>> -> memref<1x!tpu.dma_semaphore, #tpu.memory_space<semaphore_mem>>
    %68 = tpu.memref_squeeze %67 : memref<1x!tpu.dma_semaphore, #tpu.memory_space<semaphore_mem>> -> memref<!tpu.dma_semaphore, #tpu.memory_space<semaphore_mem>>
    tpu.wait_dma2 semaphore(%68 : memref<!tpu.dma_semaphore, #tpu.memory_space<semaphore_mem>>) src(%65 : memref<1x128xf32, #tpu.memory_space<any>>) dst(%66 : memref<1x128xf32, #tpu.memory_space<vmem>>)
    %c3_i32_44 = arith.constant 3 : i32
    %c0_i32_45 = arith.constant 0 : i32
    %69 = tpu.memref_slice %arg3[%24, %c0_i32_45] : memref<16x128xf32, #tpu.memory_space<any>> -> memref<1x128xf32, #tpu.memory_space<any>>
    %c3_i32_46 = arith.constant 3 : i32
    %c0_i32_47 = arith.constant 0 : i32
    %70 = tpu.memref_slice %arg5[%c3_i32_46, %c0_i32_47] : memref<8x128xf32, #tpu.memory_space<vmem>> -> memref<1x128xf32, #tpu.memory_space<vmem>>
    %71 = tpu.memref_slice %arg6[%c3_i32_44] : memref<8x!tpu.dma_semaphore, #tpu.memory_space<semaphore_mem>> -> memref<1x!tpu.dma_semaphore, #tpu.memory_space<semaphore_mem>>
    %72 = tpu.memref_squeeze %71 : memref<1x!tpu.dma_semaphore, #tpu.memory_space<semaphore_mem>> -> memref<!tpu.dma_semaphore, #tpu.memory_space<semaphore_mem>>
    tpu.wait_dma2 semaphore(%72 : memref<!tpu.dma_semaphore, #tpu.memory_space<semaphore_mem>>) src(%69 : memref<1x128xf32, #tpu.memory_space<any>>) dst(%70 : memref<1x128xf32, #tpu.memory_space<vmem>>)
    %c4_i32_48 = arith.constant 4 : i32
    %c0_i32_49 = arith.constant 0 : i32
    %73 = tpu.memref_slice %arg3[%31, %c0_i32_49] : memref<16x128xf32, #tpu.memory_space<any>> -> memref<1x128xf32, #tpu.memory_space<any>>
    %c4_i32_50 = arith.constant 4 : i32
    %c0_i32_51 = arith.constant 0 : i32
    %74 = tpu.memref_slice %arg5[%c4_i32_50, %c0_i32_51] : memref<8x128xf32, #tpu.memory_space<vmem>> -> memref<1x128xf32, #tpu.memory_space<vmem>>
    %75 = tpu.memref_slice %arg6[%c4_i32_48] : memref<8x!tpu.dma_semaphore, #tpu.memory_space<semaphore_mem>> -> memref<1x!tpu.dma_semaphore, #tpu.memory_space<semaphore_mem>>
    %76 = tpu.memref_squeeze %75 : memref<1x!tpu.dma_semaphore, #tpu.memory_space<semaphore_mem>> -> memref<!tpu.dma_semaphore, #tpu.memory_space<semaphore_mem>>
    tpu.wait_dma2 semaphore(%76 : memref<!tpu.dma_semaphore, #tpu.memory_space<semaphore_mem>>) src(%73 : memref<1x128xf32, #tpu.memory_space<any>>) dst(%74 : memref<1x128xf32, #tpu.memory_space<vmem>>)
    %c5_i32_52 = arith.constant 5 : i32
    %c0_i32_53 = arith.constant 0 : i32
    %77 = tpu.memref_slice %arg3[%38, %c0_i32_53] : memref<16x128xf32, #tpu.memory_space<any>> -> memref<1x128xf32, #tpu.memory_space<any>>
    %c5_i32_54 = arith.constant 5 : i32
    %c0_i32_55 = arith.constant 0 : i32
    %78 = tpu.memref_slice %arg5[%c5_i32_54, %c0_i32_55] : memref<8x128xf32, #tpu.memory_space<vmem>> -> memref<1x128xf32, #tpu.memory_space<vmem>>
    %79 = tpu.memref_slice %arg6[%c5_i32_52] : memref<8x!tpu.dma_semaphore, #tpu.memory_space<semaphore_mem>> -> memref<1x!tpu.dma_semaphore, #tpu.memory_space<semaphore_mem>>
    %80 = tpu.memref_squeeze %79 : memref<1x!tpu.dma_semaphore, #tpu.memory_space<semaphore_mem>> -> memref<!tpu.dma_semaphore, #tpu.memory_space<semaphore_mem>>
    tpu.wait_dma2 semaphore(%80 : memref<!tpu.dma_semaphore, #tpu.memory_space<semaphore_mem>>) src(%77 : memref<1x128xf32, #tpu.memory_space<any>>) dst(%78 : memref<1x128xf32, #tpu.memory_space<vmem>>)
    %c6_i32_56 = arith.constant 6 : i32
    %c0_i32_57 = arith.constant 0 : i32
    %81 = tpu.memref_slice %arg3[%45, %c0_i32_57] : memref<16x128xf32, #tpu.memory_space<any>> -> memref<1x128xf32, #tpu.memory_space<any>>
    %c6_i32_58 = arith.constant 6 : i32
    %c0_i32_59 = arith.constant 0 : i32
    %82 = tpu.memref_slice %arg5[%c6_i32_58, %c0_i32_59] : memref<8x128xf32, #tpu.memory_space<vmem>> -> memref<1x128xf32, #tpu.memory_space<vmem>>
    %83 = tpu.memref_slice %arg6[%c6_i32_56] : memref<8x!tpu.dma_semaphore, #tpu.memory_space<semaphore_mem>> -> memref<1x!tpu.dma_semaphore, #tpu.memory_space<semaphore_mem>>
    %84 = tpu.memref_squeeze %83 : memref<1x!tpu.dma_semaphore, #tpu.memory_space<semaphore_mem>> -> memref<!tpu.dma_semaphore, #tpu.memory_space<semaphore_mem>>
    tpu.wait_dma2 semaphore(%84 : memref<!tpu.dma_semaphore, #tpu.memory_space<semaphore_mem>>) src(%81 : memref<1x128xf32, #tpu.memory_space<any>>) dst(%82 : memref<1x128xf32, #tpu.memory_space<vmem>>)
    %c7_i32_60 = arith.constant 7 : i32
    %c0_i32_61 = arith.constant 0 : i32
    %85 = tpu.memref_slice %arg3[%52, %c0_i32_61] : memref<16x128xf32, #tpu.memory_space<any>> -> memref<1x128xf32, #tpu.memory_space<any>>
    %c7_i32_62 = arith.constant 7 : i32
    %c0_i32_63 = arith.constant 0 : i32
    %86 = tpu.memref_slice %arg5[%c7_i32_62, %c0_i32_63] : memref<8x128xf32, #tpu.memory_space<vmem>> -> memref<1x128xf32, #tpu.memory_space<vmem>>
    %87 = tpu.memref_slice %arg6[%c7_i32_60] : memref<8x!tpu.dma_semaphore, #tpu.memory_space<semaphore_mem>> -> memref<1x!tpu.dma_semaphore, #tpu.memory_space<semaphore_mem>>
    %88 = tpu.memref_squeeze %87 : memref<1x!tpu.dma_semaphore, #tpu.memory_space<semaphore_mem>> -> memref<!tpu.dma_semaphore, #tpu.memory_space<semaphore_mem>>
    tpu.wait_dma2 semaphore(%88 : memref<!tpu.dma_semaphore, #tpu.memory_space<semaphore_mem>>) src(%85 : memref<1x128xf32, #tpu.memory_space<any>>) dst(%86 : memref<1x128xf32, #tpu.memory_space<vmem>>)
    %c0 = arith.constant 0 : index
    %c0_64 = arith.constant 0 : index
    %89 = vector.load %arg5[%c0, %c0_64] : memref<8x128xf32, #tpu.memory_space<vmem>>, vector<8x128xf32>
    %c0_65 = arith.constant 0 : index
    %c0_66 = arith.constant 0 : index
    %90 = vector.load %arg2[%c0_65, %c0_66] : memref<8x1xf32, #tpu.memory_space<vmem>>, vector<8x1xf32>
    %91 = vector.broadcast %90 : vector<8x1xf32> to vector<8x128xf32>
    %92 = arith.mulf %89, %91 : vector<8x128xf32>
    %c0_67 = arith.constant 0 : index
    %c0_68 = arith.constant 0 : index
    %93 = vector.load %arg4[%c0_67, %c0_68] : memref<8x128xf32, #tpu.memory_space<vmem>>, vector<8x128xf32>
    tpu.vector_store %arg4[%c0_67, %c0_68], %92 {strides = array<i32>} : memref<8x128xf32, #tpu.memory_space<vmem>>, vector<8x128xf32>,
    return
  }
  func.func @transform_0(%arg0: i32, %arg1: memref<8xi32, #tpu.memory_space<smem>>) -> (i32, i32) {
    %c0_i32 = arith.constant 0 : i32
    %c0_i32_0 = arith.constant 0 : i32
    return %arg0, %c0_i32 : i32, i32
  }
  func.func @transform_2(%arg0: i32, %arg1: memref<8xi32, #tpu.memory_space<smem>>) -> (i32, i32) {
    %c0_i32 = arith.constant 0 : i32
    %c0_i32_0 = arith.constant 0 : i32
    return %arg0, %c0_i32 : i32, i32
  }
}

</mosaic_0001>

<bundles_post_ra>
// kernel: topk_forward.2
= control target key start
LH: loop header
LB: loop body
LE: loop exit
PB: predicated region body
PF: predicated region fallthrough
CT: control target
= control target key end

     0   :  { %vm33_vm0 = vcmask 7168   ;;  %s82_s0 = inlined_call_operand.vmem [shape: f32[16,128], index: 0, kind: input, shape index: {}]   ;;  %s83_s1 = inlined_call_operand.vmem [shape: f32[1,128], index: 1, kind: input, shape index: {}]   ;;  %s84_s2 = inlined_call_operand.vmem [shape: f32[16,1], index: 2, kind: input, shape index: {}]   ;;  %s85_s3 = inlined_call_operand.vmem [shape: f32[16,1], index: 3, kind: output, shape index: {}]  }
   0x1   :  { %v14_v0 = vld [vmem:[%s82_s0] sm:$0xff]  ;;  %v15_v2 = vld [vmem:[%s82_s0 + $0x8] sm:$0xff] }
   0x2   :  { %v40_v1 = vld [vmem:[%s83_s1] ss:$0 sm:$0xff]  ;;  %v30_v8 = vld [vmem:[%s84_s2 + $0x8] sm:$0xff] }
   0x3   :  { %v23_v3 = vmul.f32 %v40_v1, %v14_v0  ;;  %v24_v4 = vmul.f32 %v40_v1, %v15_v2  ;;  %v29_v5 = vld [vmem:[%s84_s2] sm:$0xff] }
   0x5   :  { %25 = vadd.xlane.f32.xlu0 %v23_v3 }
   0x9   :  { %27 = vadd.xlane.f32.xlu0 %v24_v4 }
  0x92   :  { %v26_v6 = vpop.xlane.xlu0 %25 }
  0x93   :  { %v31_v7 = vadd.f32 %v29_v5, %v26_v6 }
  0x95   :  { %34 = vst.msk [vmem:[%s85_s3] sm:$0xff] %vm33_vm0, %v31_v7 }
  0x96   :  { %v28_v9 = vpop.xlane.xlu0 %27 }
  0x97   :  { %v32_v10 = vadd.f32 %v30_v8, %v28_v9 }
  0x99   :  { %35 = vst.msk [vmem:[%s85_s3 + $0x8] sm:$0xff] %vm33_vm0, %v32_v10 }

// kernel: topk_forward.3
= control target key start
LH: loop header
LB: loop body
LE: loop exit
PB: predicated region body
PF: predicated region fallthrough
CT: control target
= control target key end

     0   :  { %s735_s0 = inlined_call_operand.vmem [shape: s32[8], index: 0, kind: input, shape index: {}]   ;;  %s736_s1 = inlined_call_operand.vmem [shape: f32[8,1], index: 1, kind: input, shape index: {}]   ;;  %s737_s2 = inlined_call_operand.vmem [shape: f32[16,128], index: 2, kind: input, shape index: {}]   ;;  %s738_s3 = inlined_call_operand.hbm [shape: f32[8,128], index: 3, kind: output, shape index: {}]  }
   0x1   :  { %s8_s14 = sshll.u32 %s735_s0, 4  ;;  %s9_s14 = int_to_ptr.vmem [resolvable:$true] %s8_s14 }
   0x2   :  { %s616_s15 = scalar_lea.vmem %s9_s14, 16  ;;  %p621_p1 = scmp.lt.s32.totalorder %s9_s14, %s9_s14 }
   0x3   :  { %p617_p0 = scmp.ne.s32.totalorder %s9_s14, %s616_s15  ;;  %p622_p2 = scmp.lt.s32.totalorder %s616_s15, %s616_s15 }
   0x5   :  { %p623_p3 = por %p622_p2, %p621_p1 }
   0x7   :  { %p624_p4 = pnand %p623_p3, %p617_p0 }
   0x9   :  { %627 = shalt.err (!%p624_p4)  }
   0xa   :  { %s670_s16 = smov [#allocation5]  }
   0xb   :  { %11 = dma.vmem_to_smem %s9_s14, 16, %s670_s16, [#allocation4] }
   0xc   :  { %650 = dma.done.wait [#allocation4], 16 }
   0xd   :  { %651 = vsyncadd [#allocation4], 4294967280 }
   0xe   :  { %13 = sfence }
   0xf   :  { %14 = vsyncpa [#allocation7], 0  ;;  %s18_s17 = sld [smem:[#allocation5]] }
  0x15   :  { %s19_s20 = scalar_lea.vmem %s737_s2, %s18_s17 }
  0x16   :  { %v37_v0 = vld [vmem:[%s19_s20] sm:$0x1] }
  0x17   :  { %38 = vst [vmem:[#allocation2] sm:$0x1] %v37_v0 }
  0x18   :  { %63 = vsyncadd [#allocation3], 16  ;;  %s597_s0 = sld [smem:[#allocation5 + $0x1]] }
  0x1e   :  { %s66_s23 = scalar_lea.vmem %s737_s2, %s597_s0 }
  0x1f   :  { %v86_v1 = vld [vmem:[%s66_s23] sm:$0x1] }
  0x20   :  { %87 = vst [vmem:[#allocation2 + $0x1] sm:$0x1] %v86_v1 }
  0x21   :  { %112 = vsyncadd [#allocation3 + $0x1], 16  ;;  %s598_s24 = sld [smem:[#allocation5 + $0x2]] }
  0x27   :  { %s115_s27 = scalar_lea.vmem %s737_s2, %s598_s24 }
  0x28   :  { %v135_v2 = vld [vmem:[%s115_s27] sm:$0x1] }
  0x29   :  { %136 = vst [vmem:[#allocation2 + $0x2] sm:$0x1] %v135_v2 }
  0x2a   :  { %161 = vsyncadd [#allocation3 + $0x2], 16  ;;  %s599_s28 = sld [smem:[#allocation5 + $0x3]] }
  0x30   :  { %s164_s4 = scalar_lea.vmem %s737_s2, %s599_s28 }
  0x31   :  { %v184_v3 = vld [vmem:[%s164_s4] sm:$0x1] }
  0x32   :  { %185 = vst [vmem:[#allocation2 + $0x3] sm:$0x1] %v184_v3 }
  0x33   :  { %210 = vsyncadd [#allocation3 + $0x3], 16  ;;  %s600_s5 = sld [smem:[#allocation5 + $0x4]] }
  0x39   :  { %s213_s8 = scalar_lea.vmem %s737_s2, %s600_s5 }
  0x3a   :  { %v233_v4 = vld [vmem:[%s213_s8] sm:$0x1] }
  0x3b   :  { %234 = vst [vmem:[#allocation2 + $0x4] sm:$0x1] %v233_v4 }
  0x3c   :  { %259 = vsyncadd [#allocation3 + $0x4], 16  ;;  %s601_s9 = sld [smem:[#allocation5 + $0x5]] }
  0x42   :  { %s262_s12 = scalar_lea.vmem %s737_s2, %s601_s9 }
  0x43   :  { %v282_v5 = vld [vmem:[%s262_s12] sm:$0x1] }
  0x44   :  { %283 = vst [vmem:[#allocation2 + $0x5] sm:$0x1] %v282_v5 }
  0x45   :  { %308 = vsyncadd [#allocation3 + $0x5], 16  ;;  %s602_s13 = sld [smem:[#allocation5 + $0x6]] }
  0x4b   :  { %s311_s16 = scalar_lea.vmem %s737_s2, %s602_s13 }
  0x4c   :  { %v331_v6 = vld [vmem:[%s311_s16] sm:$0x1] }
  0x4d   :  { %332 = vst [vmem:[#allocation2 + $0x6] sm:$0x1] %v331_v6 }
  0x4e   :  { %357 = vsyncadd [#allocation3 + $0x6], 16  ;;  %s603_s17 = sld [smem:[#allocation5 + $0x7]] }
  0x54   :  { %s360_s20 = scalar_lea.vmem %s737_s2, %s603_s17 }
  0x55   :  { %v380_v7 = vld [vmem:[%s360_s20] sm:$0x1] }
  0x56   :  { %381 = vst [vmem:[#allocation2 + $0x7] sm:$0x1] %v380_v7 }
  0x57   :  { %406 = vsyncadd [#allocation3 + $0x7], 16 }
  0x58   :  { %652 = dma.done.wait [#allocation3], 16 }
  0x59   :  { %653 = vsyncadd [#allocation3], 4294967280 }
  0x5a   :  { %654 = dma.done.wait [#allocation3 + $0x1], 16 }
  0x5b   :  { %655 = vsyncadd [#allocation3 + $0x1], 4294967280 }
  0x5c   :  { %656 = dma.done.wait [#allocation3 + $0x2], 16 }
  0x5d   :  { %657 = vsyncadd [#allocation3 + $0x2], 4294967280 }
  0x5e   :  { %658 = dma.done.wait [#allocation3 + $0x3], 16 }
  0x5f   :  { %659 = vsyncadd [#allocation3 + $0x3], 4294967280 }
  0x60   :  { %660 = dma.done.wait [#allocation3 + $0x4], 16 }
  0x61   :  { %661 = vsyncadd [#allocation3 + $0x4], 4294967280 }
  0x62   :  { %662 = dma.done.wait [#allocation3 + $0x5], 16 }
  0x63   :  { %663 = vsyncadd [#allocation3 + $0x5], 4294967280 }
  0x64   :  { %664 = dma.done.wait [#allocation3 + $0x6], 16 }
  0x65   :  { %665 = vsyncadd [#allocation3 + $0x6], 4294967280 }
  0x66   :  { %666 = dma.done.wait [#allocation3 + $0x7], 16 }
  0x67   :  { %667 = vsyncadd [#allocation3 + $0x7], 4294967280  ;;  %v671_v8 = vmov 0   ;;  %v425_v9 = vld [vmem:[%s736_s1] sm:$0xff]  ;;  %s672_s21 = smov [#allocation6]  }
  0x68   :  { %615 = vset.pattern.permute.xlu0 %v671_v8  ;;  %v424_v10 = vld [vmem:[#allocation2] sm:$0xff]  ;;  %s439_s22 = sshll.u32 %s672_s21, 4  ;;  %s440_s22 = int_to_ptr.vmem [resolvable:$true] %s439_s22 }
  0x69   :  { %428 = vperm.xlu0 %615, %v425_v9   ;;  %s628_s23 = scalar_lea.vmem %s440_s22, 128  ;;  %p633_p6 = scmp.lt.s32.totalorder %s440_s22, %s440_s22 }
  0x6a   :  { %p629_p5 = scmp.ne.s32.totalorder %s440_s22, %s628_s23  ;;  %p634_p7 = scmp.lt.s32.totalorder %s628_s23, %s628_s23 }
  0x6c   :  { %p635_p8 = por %p634_p7, %p633_p6 }
  0x6e   :  { %p636_p9 = pnand %p635_p8, %p629_p5 }
  0xe8   :  { %v429_v11 = vpop.permute.xlu0 %428 }
  0xe9   :  { %v431_v12 = vmul.f32 %v429_v11, %v424_v10 }
  0xeb   :  { %432 = vst [vmem:[#allocation6] sm:$0xff] %v431_v12 }
  0xec   :  { %639 = shalt.err (!%p636_p9)
}
  0xed   :  { %s640_s26 = scalar_lea.hbm %s738_s3, 128 }
  0xee   :  { %p641_p10 = scmp.ne.s32.totalorder %s738_s3, %s640_s26  ;;  %p644_p11 = scmp.lt.u32.totalorder %s640_s26, %s738_s3 }
  0xf0   :  { %p646_p12 = pnand %p644_p11, %p641_p10 }
  0xf2   :  { %649 = shalt.err (!%p646_p12)
}
  0xf3   :  { %442 = dma.vmem_to_hbm [thread:$0]  %s440_s22, 128, %s738_s3, [#allocation7]  }
  0xf4   :  { %668 = dma.done.wait [#allocation7], 128  }
  0xf5   :  { %669 = vsyncadd [#allocation7], 4294967168 }
  0xf6   :  { %446 = vsyncpa [#allocation7], 1 }
  0xf7   :  { %447 = vsyncmov [#allocation3] }
  0xfa   :  { %s448_s5 = vpop.sfrf %447 }
  0xfb   :  { %p604_p13 = scmp.ne.s32.totalorder %s448_s5, 0 }
  0xfd   :  { %452 = shalt.err (%p604_p13)  }
  0xfe   :  { %454 = vsyncmov [#allocation3 + $0x1] }
 0x101   :  { %s455_s6 = vpop.sfrf %454 }
 0x102   :  { %p605_p0 = scmp.ne.s32.totalorder %s455_s6, 0 }
 0x104   :  { %459 = shalt.err (%p605_p0)  }
 0x105   :  { %461 = vsyncmov [#allocation3 + $0x2] }
 0x108   :  { %s462_s7 = vpop.sfrf %461 }
 0x109   :  { %p606_p1 = scmp.ne.s32.totalorder %s462_s7, 0 }
 0x10b   :  { %466 = shalt.err (%p606_p1)  }
 0x10c   :  { %468 = vsyncmov [#allocation3 + $0x3] }
 0x10f   :  { %s469_s8 = vpop.sfrf %468 }
 0x110   :  { %p607_p2 = scmp.ne.s32.totalorder %s469_s8, 0 }
 0x112   :  { %473 = shalt.err (%p607_p2)  }
 0x113   :  { %475 = vsyncmov [#allocation3 + $0x4] }
 0x116   :  { %s476_s3 = vpop.sfrf %475 }
 0x117   :  { %p608_p3 = scmp.ne.s32.totalorder %s476_s3, 0 }
 0x119   :  { %480 = shalt.err (%p608_p3)  }
 0x11a   :  { %482 = vsyncmov [#allocation3 + $0x5] }
 0x11d   :  { %s483_s9 = vpop.sfrf %482 }
 0x11e   :  { %p609_p4 = scmp.ne.s32.totalorder %s483_s9, 0 }
 0x120   :  { %487 = shalt.err (%p609_p4)  }
 0x121   :  { %489 = vsyncmov [#allocation3 + $0x6] }
 0x124   :  { %s490_s10 = vpop.sfrf %489 }
 0x125   :  { %p610_p5 = scmp.ne.s32.totalorder %s490_s10, 0 }
 0x127   :  { %494 = shalt.err (%p610_p5)  }
 0x128   :  { %496 = vsyncmov [#allocation3 + $0x7] }
 0x12b   :  { %s497_s11 = vpop.sfrf %496 }
 0x12c   :  { %p611_p6 = scmp.ne.s32.totalorder %s497_s11, 0 }
 0x12e   :  { %501 = shalt.err (%p611_p6)  }

</bundles_post_ra>
